<compile_context>
chip_gen: v7x
topology: tpu7x:2x2x1
jax: 0.10.0
libtpu: 0.0.40
codegen_flags: <defaults>
</compile_context>

<pallas_src>
import numpy as np
import jax
import jax.numpy as jnp
from jax.experimental import pallas as pl
from jax.experimental.pallas import tpu as pltpu


_MAX_TILE_ROWS = 512  # keeps the f32 hidden tile at <= 512 * 128 * 4B = 256 KiB


def mlp_kernel(x_ref, w1_ref, b1_ref, w2_ref, b2_ref, o_ref):
    # Layer 1: bf16 x @ bf16 W1 on the MXU, f32 accumulation; bias + ReLU in f32.
    h = jnp.dot(x_ref[...], w1_ref[...], preferred_element_type=jnp.float32)
    h = jnp.maximum(h + b1_ref[...], 0.0)          # b1 is (1, H_pad) -> row broadcast
    # Layer 2: round hidden to the weight dtype so this matmul is also bf16 on the
    # MXU; accumulate in f32, add bias, cast once on store.
    y = jnp.dot(h.astype(w2_ref.dtype), w2_ref[...], preferred_element_type=jnp.float32)
    o_ref[...] = (y + b2_ref[...]).astype(o_ref.dtype)


def _round_up(x, m):
    return ((x + m - 1) // m) * m


def _pad_axis(a, axis, target):
    pad = target - a.shape[axis]
    if pad <= 0:
        return a
    widths = [(0, 0)] * a.ndim
    widths[axis] = (0, pad)
    return jnp.pad(a, widths)


def _device_info():
    """(physical VMEM bytes per TensorCore, # TensorCores sharing the grid)."""
    phys_vmem = 64 * 1024 * 1024          # conservative default (v7x per-TC)
    num_tc = 1
    try:
        info = pltpu.get_tpu_info()
        phys_vmem = int(getattr(info, "vmem_capacity_bytes", phys_vmem))
    except Exception:
        pass
    try:
        kind = jax.devices()[0].device_kind.lower()
        # v7x (and v4/v5p megacore) expose 2 TensorCores behind one device; the
        # "parallel" grid axis shards across them.
        if ("v7" in kind) or ("7x" in kind) or ("v4" in kind):
            num_tc = 2
    except Exception:
        pass
    return phys_vmem, num_tc


def _pick_batch_tile(B, *, num_tc, vmem_rows_cap):
    """Rows per grid step.

    * single-TC (v5e/v6e): minimise grid steps (ideally 1) — per-step pipeline
      overhead (~0.35us) dominates this mem-light kernel.
    * v7x (2 TCs): >= num_tc balanced, 16-aligned tiles so both cores get work.
    * always cap rows so double-buffered x/out tiles + the f32 hidden fit VMEM.
    """
    max_rows = max(16, min(_MAX_TILE_ROWS, int(vmem_rows_cap)))

    def _align_down(t):
        if t >= 128:
            return (t // 128) * 128
        return max(16, (t // 16) * 16)

    if num_tc <= 1 or B <= 16:
        if B <= max_rows:
            return B                       # one step, zero pipeline overhead
        return _align_down(max_rows)

    # Balanced split across TensorCores: ceil(B / num_tc) rounded UP to 16.
    tile = _round_up(pl.cdiv(B, num_tc), 16)
    if tile > max_rows:
        tile = _align_down(max_rows)
    if tile >= B:                          # degenerate tiny batch
        return B
    return tile


def _mlp_call(x, w1p, b1p, w2p, b2p, *, batch_tile, out_dtype,
              vmem_limit_bytes, cost, single_buffer_weights):
    B, d_in = x.shape
    h_pad = w1p.shape[1]
    d_out_pad = w2p.shape[1]
    grid = (pl.cdiv(B, batch_tile),)

    def weight_spec(shape):
        if single_buffer_weights:
            # Constant-index operand: never re-fetched, so 1 buffer is enough.
            return pl.BlockSpec(shape, lambda i: (0, 0), pipeline_mode=pl.Buffered(1))
        return pl.BlockSpec(shape, lambda i: (0, 0))

    return pl.pallas_call(
        mlp_kernel,
        out_shape=jax.ShapeDtypeStruct((B, d_out_pad), out_dtype),
        grid_spec=pl.GridSpec(
            grid=grid,
            in_specs=[
                pl.BlockSpec((batch_tile, d_in), lambda i: (i, 0)),   # x (pipelined)
                weight_spec((d_in, h_pad)),                           # W1 (resident)
                weight_spec((1, h_pad)),                              # b1 (resident)
                weight_spec((h_pad, d_out_pad)),                      # W2 (resident)
                weight_spec((1, d_out_pad)),                          # b2 (resident)
            ],
            out_specs=pl.BlockSpec((batch_tile, d_out_pad), lambda i: (i, 0)),
        ),
        compiler_params=pltpu.CompilerParams(
            dimension_semantics=("parallel",),
            vmem_limit_bytes=int(vmem_limit_bytes),
        ),
        cost_estimate=cost,
    )(x, w1p, b1p, w2p, b2p)


def small_dataset_image_decoder(x, w1, b1, w2, b2, *, batch_tile=None, out_dtype=None):
    B, d_in = x.shape
    d_in2, h = w1.shape
    h2, d_out = w2.shape
    assert d_in2 == d_in and h2 == h
    assert b1.shape == (1, h) and b2.shape == (1, d_out)

    out_dtype = x.dtype if out_dtype is None else out_dtype
    in_item = np.dtype(x.dtype).itemsize
    out_item = np.dtype(out_dtype).itemsize

    # Lane-dense padding of the hidden and output feature dims (zero pads are
    # numerically inert: relu(0+0)=0 and the extra W2 rows/cols are zero).
    h_pad = _round_up(h, 128)
    d_out_pad = _round_up(d_out, 128)
    w1p = _pad_axis(w1, 1, h_pad)
    b1p = _pad_axis(b1, 1, h_pad)
    w2p = _pad_axis(_pad_axis(w2, 0, h_pad), 1, d_out_pad)
    b2p = _pad_axis(b2, 1, d_out_pad)

    phys_vmem, num_tc = _device_info()

    w_bytes = (w1p.size * np.dtype(w1p.dtype).itemsize
               + w2p.size * np.dtype(w2p.dtype).itemsize
               + b1p.size * np.dtype(b1p.dtype).itemsize
               + b2p.size * np.dtype(b2p.dtype).itemsize)

    if batch_tile is None:
        # Per-row VMEM cost: double-buffered x and out tiles + f32 hidden tile.
        row_bytes = 2 * d_in * in_item + 2 * d_out_pad * out_item + h_pad * 4
        # Per-generation scoped-VMEM budget, minus (possibly double-buffered) weights.
        budget = max(phys_vmem // 4 - 2 * w_bytes - (1 << 20), 1 << 20)
        batch_tile = _pick_batch_tile(B, num_tc=num_tc,
                                      vmem_rows_cap=budget // max(row_bytes, 1))
    batch_tile = min(int(batch_tile), B)
    if batch_tile < B:
        batch_tile = max(8, (batch_tile // 8) * 8)   # sublane alignment for partial blocks

    working_set = (2 * batch_tile * d_in * in_item
                   + 2 * batch_tile * d_out_pad * out_item
                   + batch_tile * h_pad * 4
                   + 2 * w_bytes)
    vmem_limit_bytes = min(phys_vmem * 3 // 4, max(4 * working_set, 16 << 20))

    flops = 2 * B * (d_in * h_pad + h_pad * d_out_pad)
    bytes_accessed = int(x.size * in_item + w_bytes + B * d_out_pad * out_item)
    cost = pl.CostEstimate(flops=flops, transcendentals=0, bytes_accessed=bytes_accessed)

    try:
        y = _mlp_call(x, w1p, b1p, w2p, b2p, batch_tile=batch_tile,
                      out_dtype=out_dtype, vmem_limit_bytes=vmem_limit_bytes,
                      cost=cost, single_buffer_weights=True)
    except Exception:
        # pipeline_mode=pl.Buffered(1) unsupported on this jax build / lowering:
        # fall back to default double-buffered weight specs (weights are tiny).
        y = _mlp_call(x, w1p, b1p, w2p, b2p, batch_tile=batch_tile,
                      out_dtype=out_dtype, vmem_limit_bytes=vmem_limit_bytes,
                      cost=cost, single_buffer_weights=False)

    return y if d_out_pad == d_out else y[:, :d_out]


def xavier_uniform(key, fan_in, fan_out, shape, dtype=jnp.float32):
    # Matches torch.nn.init.xavier_uniform_: U(-a, a), a = sqrt(6 / (fan_in + fan_out))
    bound = (6.0 / (fan_in + fan_out)) ** 0.5
    return jax.random.uniform(key, shape, dtype=dtype, minval=-bound, maxval=bound)


if __name__ == "__main__":
    # Small shapes consistent with SmallDatasetImageDecoder(input_dim, hidden_dim,
    # output_dim): hidden_dim=80 kept from the module, input/output dims shrunk
    # from 2500 -> 200.  H=80 and D_out=200 are deliberately NOT multiples of 128
    # so the wrapper's lane-dense padding path is exercised.
    B, D_IN, HID, D_OUT = 96, 200, 80, 200

    key = jax.random.PRNGKey(0)
    k_x, k_w1, k_w2, k_x2 = jax.random.split(key, 4)

    x = jax.random.normal(k_x, (B, D_IN), dtype=jnp.float32)
    # Parameters stored as [in, out] so the kernel computes x @ W directly
    # (equivalent to nn.Linear's x @ W.T + b). Xavier-uniform weights, zero biases.
    w1 = xavier_uniform(k_w1, D_IN, HID, (D_IN, HID))
    b1 = jnp.zeros((1, HID), dtype=jnp.float32)
    w2 = xavier_uniform(k_w2, HID, D_OUT, (HID, D_OUT))
    b2 = jnp.zeros((1, D_OUT), dtype=jnp.float32)

    # bf16 storage for the bandwidth-heavy operands; biases stay f32.
    x_bf = x.astype(jnp.bfloat16)
    w1_bf = w1.astype(jnp.bfloat16)
    w2_bf = w2.astype(jnp.bfloat16)

    out = jax.block_until_ready(small_dataset_image_decoder(x_bf, w1_bf, b1, w2_bf, b2))

    # Reference: same math on the bf16-valued operands with f32 accumulation,
    # hidden rounded to bf16 exactly like the kernel (documented quantization).
    xf = x_bf.astype(jnp.float32)
    w1f = w1_bf.astype(jnp.float32)
    w2f = w2_bf.astype(jnp.float32)
    h_ref = jnp.maximum(xf @ w1f + b1, 0.0).astype(jnp.bfloat16).astype(jnp.float32)
    ref = h_ref @ w2f + b2

    assert out.shape == (B, D_OUT)
    out_f32 = out.astype(jnp.float32)
    assert jnp.allclose(out_f32, ref, atol=3e-2, rtol=3e-2), float(
        jnp.max(jnp.abs(out_f32 - ref)))

    # Ragged-batch check: B=41 with a forced 16-row tile so the last grid step
    # reads an OOB-padded x block and relies on output-write clipping.
    B2 = 41
    x2_bf = jax.random.normal(k_x2, (B2, D_IN), dtype=jnp.float32).astype(jnp.bfloat16)
    out2 = jax.block_until_ready(
        small_dataset_image_decoder(x2_bf, w1_bf, b1, w2_bf, b2, batch_tile=16))
    h2 = jnp.maximum(x2_bf.astype(jnp.float32) @ w1f + b1, 0.0)
    h2 = h2.astype(jnp.bfloat16).astype(jnp.float32)
    ref2 = h2 @ w2f + b2
    assert out2.shape == (B2, D_OUT)
    assert jnp.allclose(out2.astype(jnp.float32), ref2, atol=3e-2, rtol=3e-2), float(
        jnp.max(jnp.abs(out2.astype(jnp.float32) - ref2)))

    print("KERNEL_OK")
</pallas_src>

<mosaic_0001>
module attributes {stable_mosaic.version = 11 : i64} {
  func.func @mlp_kernel(%arg0: i32, %arg1: memref<96x200xbf16, #tpu.memory_space<vmem>>, %arg2: memref<200x128xbf16, #tpu.memory_space<vmem>>, %arg3: memref<1x128xf32, #tpu.memory_space<vmem>>, %arg4: memref<128x256xbf16, #tpu.memory_space<vmem>>, %arg5: memref<1x256xf32, #tpu.memory_space<vmem>>, %arg6: memref<96x256xbf16, #tpu.memory_space<vmem>>) attributes {dimension_semantics = [#tpu.dimension_semantics<parallel>], iteration_bounds = array<i64: 1>, scalar_prefetch = 0 : i64, scratch_operands = 0 : i64, tpu.core_type = #tpu.core_type<tc>, window_params = [{transform_indices = @transform_0, window_bounds = array<i64: 96, 200>}, {pipeline_mode = #tpu.pipeline_mode<synchronous>, transform_indices = @transform_1, window_bounds = array<i64: 200, 128>}, {pipeline_mode = #tpu.pipeline_mode<synchronous>, transform_indices = @transform_2, window_bounds = array<i64: 1, 128>}, {pipeline_mode = #tpu.pipeline_mode<synchronous>, transform_indices = @transform_3, window_bounds = array<i64: 128, 256>}, {pipeline_mode = #tpu.pipeline_mode<synchronous>, transform_indices = @transform_4, window_bounds = array<i64: 1, 256>}, {transform_indices = @transform_5, window_bounds = array<i64: 96, 256>}]} {
    %c0 = arith.constant 0 : index
    %c0_0 = arith.constant 0 : index
    %0 = vector.load %arg1[%c0, %c0_0] : memref<96x200xbf16, #tpu.memory_space<vmem>>, vector<96x200xbf16>
    %c0_1 = arith.constant 0 : index
    %c0_2 = arith.constant 0 : index
    %1 = vector.load %arg2[%c0_1, %c0_2] : memref<200x128xbf16, #tpu.memory_space<vmem>>, vector<200x128xbf16>
    %cst = arith.constant dense<0.000000e+00> : vector<96x128xf32>
    %2 = tpu.matmul %0, %1, %cst {dimension_numbers = #tpu.dot_dimension_numbers<[1], [0], [0], [1], [0, 0, 1, 1], [], []>} : vector<96x200xbf16>, vector<200x128xbf16>, vector<96x128xf32> -> vector<96x128xf32>
    %c0_3 = arith.constant 0 : index
    %c0_4 = arith.constant 0 : index
    %3 = vector.load %arg3[%c0_3, %c0_4] : memref<1x128xf32, #tpu.memory_space<vmem>>, vector<1x128xf32>
    %4 = vector.broadcast %3 : vector<1x128xf32> to vector<96x128xf32>
    %5 = arith.addf %2, %4 : vector<96x128xf32>
    %cst_5 = arith.constant 0.000000e+00 : f32
    %6 = vector.broadcast %cst_5 : f32 to vector<96x128xf32>
    %7 = arith.maximumf %5, %6 : vector<96x128xf32>
    %8 = arith.truncf %7 : vector<96x128xf32> to vector<96x128xbf16>
    %c0_6 = arith.constant 0 : index
    %c0_7 = arith.constant 0 : index
    %9 = vector.load %arg4[%c0_6, %c0_7] : memref<128x256xbf16, #tpu.memory_space<vmem>>, vector<128x256xbf16>
    %cst_8 = arith.constant dense<0.000000e+00> : vector<96x256xf32>
    %10 = tpu.matmul %8, %9, %cst_8 {dimension_numbers = #tpu.dot_dimension_numbers<[1], [0], [0], [1], [0, 0, 1, 1], [], []>} : vector<96x128xbf16>, vector<128x256xbf16>, vector<96x256xf32> -> vector<96x256xf32>
    %c0_9 = arith.constant 0 : index
    %c0_10 = arith.constant 0 : index
    %11 = vector.load %arg5[%c0_9, %c0_10] : memref<1x256xf32, #tpu.memory_space<vmem>>, vector<1x256xf32>
    %12 = vector.broadcast %11 : vector<1x256xf32> to vector<96x256xf32>
    %13 = arith.addf %10, %12 : vector<96x256xf32>
    %14 = arith.truncf %13 : vector<96x256xf32> to vector<96x256xbf16>
    %c0_11 = arith.constant 0 : index
    %c0_12 = arith.constant 0 : index
    %15 = vector.load %arg6[%c0_11, %c0_12] : memref<96x256xbf16, #tpu.memory_space<vmem>>, vector<96x256xbf16>
    tpu.vector_store %arg6[%c0_11, %c0_12], %14 {strides = array<i32>} : memref<96x256xbf16, #tpu.memory_space<vmem>>, vector<96x256xbf16>,
    return
  }
  func.func @transform_0(%arg0: i32) -> (i32, i32) {
    %c0_i32 = arith.constant 0 : i32
    %c0_i32_0 = arith.constant 0 : i32
    return %arg0, %c0_i32 : i32, i32
  }
  func.func @transform_1(%arg0: i32) -> (i32, i32) {
    %c0_i32 = arith.constant 0 : i32
    %c0_i32_0 = arith.constant 0 : i32
    %c0_i32_1 = arith.constant 0 : i32
    return %c0_i32, %c0_i32_0 : i32, i32
  }
  func.func @transform_2(%arg0: i32) -> (i32, i32) {
    %c0_i32 = arith.constant 0 : i32
    %c0_i32_0 = arith.constant 0 : i32
    %c0_i32_1 = arith.constant 0 : i32
    return %c0_i32, %c0_i32_0 : i32, i32
  }
  func.func @transform_3(%arg0: i32) -> (i32, i32) {
    %c0_i32 = arith.constant 0 : i32
    %c0_i32_0 = arith.constant 0 : i32
    %c0_i32_1 = arith.constant 0 : i32
    return %c0_i32, %c0_i32_0 : i32, i32
  }
  func.func @transform_4(%arg0: i32) -> (i32, i32) {
    %c0_i32 = arith.constant 0 : i32
    %c0_i32_0 = arith.constant 0 : i32
    %c0_i32_1 = arith.constant 0 : i32
    return %c0_i32, %c0_i32_0 : i32, i32
  }
  func.func @transform_5(%arg0: i32) -> (i32, i32) {
    %c0_i32 = arith.constant 0 : i32
    %c0_i32_0 = arith.constant 0 : i32
    return %arg0, %c0_i32 : i32, i32
  }
}

module attributes {stable_mosaic.version = 11 : i64} {
  func.func @mlp_kernel(%arg0: i32, %arg1: memref<96x200xbf16, #tpu.memory_space<vmem>>, %arg2: memref<200x128xbf16, #tpu.memory_space<vmem>>, %arg3: memref<1x128xf32, #tpu.memory_space<vmem>>, %arg4: memref<128x256xbf16, #tpu.memory_space<vmem>>, %arg5: memref<1x256xf32, #tpu.memory_space<vmem>>, %arg6: memref<96x256xbf16, #tpu.memory_space<vmem>>) attributes {dimension_semantics = [#tpu.dimension_semantics<parallel>], iteration_bounds = array<i64: 1>, scalar_prefetch = 0 : i64, scratch_operands = 0 : i64, tpu.core_type = #tpu.core_type<tc>, window_params = [{transform_indices = @transform_0, window_bounds = array<i64: 96, 200>}, {pipeline_mode = #tpu.pipeline_mode<synchronous>, transform_indices = @transform_1, window_bounds = array<i64: 200, 128>}, {pipeline_mode = #tpu.pipeline_mode<synchronous>, transform_indices = @transform_2, window_bounds = array<i64: 1, 128>}, {pipeline_mode = #tpu.pipeline_mode<synchronous>, transform_indices = @transform_3, window_bounds = array<i64: 128, 256>}, {pipeline_mode = #tpu.pipeline_mode<synchronous>, transform_indices = @transform_4, window_bounds = array<i64: 1, 256>}, {transform_indices = @transform_5, window_bounds = array<i64: 96, 256>}]} {
    %c0 = arith.constant 0 : index
    %c0_0 = arith.constant 0 : index
    %0 = vector.load %arg1[%c0, %c0_0] : memref<96x200xbf16, #tpu.memory_space<vmem>>, vector<96x200xbf16>
    %c0_1 = arith.constant 0 : index
    %c0_2 = arith.constant 0 : index
    %1 = vector.load %arg2[%c0_1, %c0_2] : memref<200x128xbf16, #tpu.memory_space<vmem>>, vector<200x128xbf16>
    %cst = arith.constant dense<0.000000e+00> : vector<96x128xf32>
    %2 = tpu.matmul %0, %1, %cst {dimension_numbers = #tpu.dot_dimension_numbers<[1], [0], [0], [1], [0, 0, 1, 1], [], []>} : vector<96x200xbf16>, vector<200x128xbf16>, vector<96x128xf32> -> vector<96x128xf32>
    %c0_3 = arith.constant 0 : index
    %c0_4 = arith.constant 0 : index
    %3 = vector.load %arg3[%c0_3, %c0_4] : memref<1x128xf32, #tpu.memory_space<vmem>>, vector<1x128xf32>
    %4 = vector.broadcast %3 : vector<1x128xf32> to vector<96x128xf32>
    %5 = arith.addf %2, %4 : vector<96x128xf32>
    %cst_5 = arith.constant 0.000000e+00 : f32
    %6 = vector.broadcast %cst_5 : f32 to vector<96x128xf32>
    %7 = arith.maximumf %5, %6 : vector<96x128xf32>
    %8 = arith.truncf %7 : vector<96x128xf32> to vector<96x128xbf16>
    %c0_6 = arith.constant 0 : index
    %c0_7 = arith.constant 0 : index
    %9 = vector.load %arg4[%c0_6, %c0_7] : memref<128x256xbf16, #tpu.memory_space<vmem>>, vector<128x256xbf16>
    %cst_8 = arith.constant dense<0.000000e+00> : vector<96x256xf32>
    %10 = tpu.matmul %8, %9, %cst_8 {dimension_numbers = #tpu.dot_dimension_numbers<[1], [0], [0], [1], [0, 0, 1, 1], [], []>} : vector<96x128xbf16>, vector<128x256xbf16>, vector<96x256xf32> -> vector<96x256xf32>
    %c0_9 = arith.constant 0 : index
    %c0_10 = arith.constant 0 : index
    %11 = vector.load %arg5[%c0_9, %c0_10] : memref<1x256xf32, #tpu.memory_space<vmem>>, vector<1x256xf32>
    %12 = vector.broadcast %11 : vector<1x256xf32> to vector<96x256xf32>
    %13 = arith.addf %10, %12 : vector<96x256xf32>
    %14 = arith.truncf %13 : vector<96x256xf32> to vector<96x256xbf16>
    %c0_11 = arith.constant 0 : index
    %c0_12 = arith.constant 0 : index
    %15 = vector.load %arg6[%c0_11, %c0_12] : memref<96x256xbf16, #tpu.memory_space<vmem>>, vector<96x256xbf16>
    tpu.vector_store %arg6[%c0_11, %c0_12], %14 {strides = array<i32>} : memref<96x256xbf16, #tpu.memory_space<vmem>>, vector<96x256xbf16>,
    return
  }
  func.func @transform_0(%arg0: i32) -> (i32, i32) {
    %c0_i32 = arith.constant 0 : i32
    %c0_i32_0 = arith.constant 0 : i32
    return %arg0, %c0_i32 : i32, i32
  }
  func.func @transform_1(%arg0: i32) -> (i32, i32) {
    %c0_i32 = arith.constant 0 : i32
    %c0_i32_0 = arith.constant 0 : i32
    %c0_i32_1 = arith.constant 0 : i32
    return %c0_i32, %c0_i32_0 : i32, i32
  }
  func.func @transform_2(%arg0: i32) -> (i32, i32) {
    %c0_i32 = arith.constant 0 : i32
    %c0_i32_0 = arith.constant 0 : i32
    %c0_i32_1 = arith.constant 0 : i32
    return %c0_i32, %c0_i32_0 : i32, i32
  }
  func.func @transform_3(%arg0: i32) -> (i32, i32) {
    %c0_i32 = arith.constant 0 : i32
    %c0_i32_0 = arith.constant 0 : i32
    %c0_i32_1 = arith.constant 0 : i32
    return %c0_i32, %c0_i32_0 : i32, i32
  }
  func.func @transform_4(%arg0: i32) -> (i32, i32) {
    %c0_i32 = arith.constant 0 : i32
    %c0_i32_0 = arith.constant 0 : i32
    %c0_i32_1 = arith.constant 0 : i32
    return %c0_i32, %c0_i32_0 : i32, i32
  }
  func.func @transform_5(%arg0: i32) -> (i32, i32) {
    %c0_i32 = arith.constant 0 : i32
    %c0_i32_0 = arith.constant 0 : i32
    return %arg0, %c0_i32 : i32, i32
  }
}

</mosaic_0001>

<bundles_post_ra>
// kernel: tpu_custom_call.1
= control target key start
LH: loop header
LB: loop body
LE: loop exit
PB: predicated region body
PF: predicated region fallthrough
CT: control target
= control target key end

     0   :  { %10 = vsyncpa [#allocation3], 0  ;;  %s1046_s0 = inlined_call_operand.hbm [shape: bf16[96,200], index: 0, kind: input, shape index: {}]   ;;  %s1047_s1 = inlined_call_operand.hbm [shape: bf16[200,128], index: 1, kind: input, shape index: {}]   ;;  %s1048_s2 = inlined_call_operand.vmem [shape: f32[1,128], index: 2, kind: input, shape index: {}]   ;;  %s1049_s3 = inlined_call_operand.hbm [shape: bf16[128,256], index: 3, kind: input, shape index: {}]   ;;  %s1050_s4 = inlined_call_operand.vmem [shape: f32[1,256], index: 4, kind: input, shape index: {}]   ;;  %s1051_s5 = inlined_call_operand.hbm [shape: bf16[96,256], index: 5, kind: output, shape index: {}]  }
   0x1   :  { %11 = vsyncpa [#allocation6], 0 }
   0x2   :  { %12 = vsyncpa [#allocation4], 0  ;;  %s891_s18 = smov [#allocation5]   ;;  %s797_s22 = scalar_lea.hbm %s1047_s1, 1600 }
   0x3   :  { %s30_s19 = sshll.u32 %s891_s18, 4  ;;  %p798_p0 = scmp.ne.s32.totalorder %s1047_s1, %s797_s22  ;;  %s31_s19 = int_to_ptr.vmem [resolvable:$true] %s30_s19 }
   0x4   :  { %p801_p1 = scmp.lt.u32.totalorder %s797_s22, %s1047_s1 }
   0x6   :  { %p803_p2 = pnand %p801_p1, %p798_p0 }
   0x8   :  { %806 = shalt.err (!%p803_p2)
}
   0x9   :  { %s807_s27 = scalar_lea.vmem %s31_s19, 1600  ;;  %p812_p4 = scmp.lt.s32.totalorder %s31_s19, %s31_s19 }
   0xa   :  { %p808_p3 = scmp.ne.s32.totalorder %s31_s19, %s807_s27  ;;  %p813_p5 = scmp.lt.s32.totalorder %s807_s27, %s807_s27 }
   0xc   :  { %p814_p6 = por %p813_p5, %p812_p4 }
   0xe   :  { %p815_p7 = pnand %p814_p6, %p808_p3 }
  0x10   :  { %818 = shalt.err (!%p815_p7)
}
  0x11   :  { %s892_s28 = smov 64   ;;  %s893_s29 = smov 4  }
  0x12   :  { %36 = dma.hbm_to_vmem [thread:$0]  %s1047_s1, 1600, %s31_s19, [#allocation6], %s892_s28, %s892_s28, %s893_s29  }
  0x13   :  { %s894_s7 = smov [#allocation2]   ;;  %s819_s11 = scalar_lea.hbm %s1046_s0, 1536 }
  0x14   :  { %s18_s8 = sshll.u32 %s894_s7, 4  ;;  %p820_p8 = scmp.ne.s32.totalorder %s1046_s0, %s819_s11  ;;  %s19_s8 = int_to_ptr.vmem [resolvable:$true] %s18_s8 }
  0x15   :  { %p823_p9 = scmp.lt.u32.totalorder %s819_s11, %s1046_s0 }
  0x17   :  { %p825_p10 = pnand %p823_p9, %p820_p8 }
  0x19   :  { %828 = shalt.err (!%p825_p10)
}
  0x1a   :  { %s829_s16 = scalar_lea.vmem %s19_s8, 1536  ;;  %p834_p12 = scmp.lt.s32.totalorder %s19_s8, %s19_s8 }
  0x1b   :  { %p830_p11 = scmp.ne.s32.totalorder %s19_s8, %s829_s16  ;;  %p835_p13 = scmp.lt.s32.totalorder %s829_s16, %s829_s16 }
  0x1d   :  { %p836_p0 = por %p835_p13, %p834_p12 }
  0x1f   :  { %p837_p1 = pnand %p836_p0, %p830_p11 }
  0x21   :  { %840 = shalt.err (!%p837_p1)
}
  0x22   :  { %s895_s1 = smov 128   ;;  %s896_s17 = smov 8  }
  0x23   :  { %24 = dma.hbm_to_vmem [thread:$0]  %s1046_s0, 1536, %s19_s8, [#allocation3], %s895_s1, %s895_s1, %s896_s17  }
  0x24   :  { %s897_s20 = smov [#allocation7]   ;;  %s841_s24 = scalar_lea.hbm %s1049_s3, 2048 }
  0x25   :  { %s44_s21 = sshll.u32 %s897_s20, 4  ;;  %p842_p2 = scmp.ne.s32.totalorder %s1049_s3, %s841_s24  ;;  %s45_s21 = int_to_ptr.vmem [resolvable:$true] %s44_s21 }
  0x26   :  { %p845_p3 = scmp.lt.u32.totalorder %s841_s24, %s1049_s3 }
  0x28   :  { %p847_p4 = pnand %p845_p3, %p842_p2 }
  0x2a   :  { %850 = shalt.err (!%p847_p4)
}
  0x2b   :  { %s851_s29 = scalar_lea.vmem %s45_s21, 2048  ;;  %p856_p6 = scmp.lt.s32.totalorder %s45_s21, %s45_s21 }
  0x2c   :  { %p852_p5 = scmp.ne.s32.totalorder %s45_s21, %s851_s29  ;;  %p857_p7 = scmp.lt.s32.totalorder %s851_s29, %s851_s29 }
  0x2e   :  { %p858_p8 = por %p857_p7, %p856_p6 }
  0x30   :  { %p859_p9 = pnand %p858_p8, %p852_p5 }
  0x32   :  { %862 = shalt.err (!%p859_p9)
}
  0x33   :  { %50 = dma.hbm_to_vmem [thread:$0]  %s1049_s3, 2048, %s45_s21, [#allocation6], %s895_s1, %s895_s1, %s896_s17  }
  0x34   :  { %885 = dma.done.wait [#allocation3], 1536  }
  0x35   :  { %886 = vsyncadd [#allocation3], 4294965760 }
  0x36   :  { %887 = dma.done.wait [#allocation6], 3648  }
  0x37   :  { %888 = vsyncadd [#allocation6], 4294963648  ;;  %v898_v0 = vmov 0   ;;  %v742_v1 = vld [vmem:[#allocation5] sm:$0xff]   ;;  %v743_v2 = vld [vmem:[#allocation5 + $0x8] sm:$0xff]   ;;  %vm236_vm0 = vcmask 588800  }
  0x38   :  { %259 = vmatprep.subr.bf16.mxu0 %v898_v0  ;;  %498 = vmatprep.mubr.bf16.mxu1 %v898_v0  ;;  %v744_v3 = vld [vmem:[#allocation5 + $0x10] sm:$0xff]   ;;  %v745_v4 = vld [vmem:[#allocation5 + $0x18] sm:$0xff]   ;;  %v757_v5 = vld [vmem:[#allocation2 + $0x4] ss:$8 sps:$4 sm:$0xff]   ;;  %vm255_vm1 = vcmask 1043456  }
  0x39   :  { %260 = vmatpush1.bf16.msra.mxu0 %v742_v1  ;;  %v746_v6 = vld [vmem:[#allocation5 + $0x20] sm:$0xff]   ;;  %687 = vmatprep.mubr.msk.bf16.mxu0 %vm236_vm0, %v757_v5  ;;  %v747_v7 = vld [vmem:[#allocation5 + $0x28] sm:$0xff]   ;;  %v748_v8 = vld [vmem:[#allocation5 + $0x30] sm:$0xff]  }
  0x3a   :  { %261 = vmatprep.subr.bf16.mxu0 %v898_v0  ;;  %v773_v9 = vld [vmem:[#allocation7 + $0x4] ss:$8 sps:$4 sm:$0xff]   ;;  %v775_v10 = vld [vmem:[#allocation7] ss:$8 sps:$4 sm:$0xff]   ;;  %v776_v11 = vld [vmem:[#allocation7 + $0x14] ss:$8 sps:$4 sm:$0xff]  }
  0x3b   :  { %466 = vmatprep.subr.bf16.mxu1 %v773_v9  ;;  %v778_v12 = vld [vmem:[#allocation7 + $0x10] ss:$8 sps:$4 sm:$0xff]   ;;  %v779_v13 = vld [vmem:[#allocation7 + $0x24] ss:$8 sps:$4 sm:$0xff]   ;;  %v781_v15 = vld [vmem:[#allocation7 + $0x20] ss:$8 sps:$4 sm:$0xff]  }
  0x3c   :  { %467 = vmatpush1.bf16.msra.mxu1 %v775_v10  ;;  %v749_v14 = vld [vmem:[#allocation5 + $0x38] sm:$0xff]   ;;  %v750_v17 = vld [vmem:[#allocation5 + $0x40] sm:$0xff]   ;;  %v785_v19 = vld [vmem:[#allocation7 + $0x44] ss:$8 sps:$4 sm:$0xff]  }
  0x3d   :  { %262 = vmatpush1.bf16.msra.mxu0 %v743_v2  ;;  %468 = vmatprep.subr.bf16.mxu1 %v776_v11  ;;  %v782_v16 = vld [vmem:[#allocation7 + $0x34] ss:$8 sps:$4 sm:$0xff]   ;;  %v784_v18 = vld [vmem:[#allocation7 + $0x30] ss:$8 sps:$4 sm:$0xff]   ;;  %v751_v20 = vld [vmem:[#allocation5 + $0x48] sm:$0xff]  }
  0x3e   :  { %263 = vmatprep.subr.bf16.mxu0 %v898_v0  ;;  %v787_v21 = vld [vmem:[#allocation7 + $0x40] ss:$8 sps:$4 sm:$0xff]   ;;  %v788_v22 = vld [vmem:[#allocation7 + $0x54] ss:$8 sps:$4 sm:$0xff]   ;;  %v752_v23 = vld [vmem:[#allocation5 + $0x50] sm:$0xff]  }
  0x3f   :  { %v790_v24 = vld [vmem:[#allocation7 + $0x50] ss:$8 sps:$4 sm:$0xff]   ;;  %v754_v26 = vld [vmem:[#allocation5 + $0x60] ss:$0 sps:$4 sm:$0xff]   ;;  %v760_v30 = vld [vmem:[#allocation2 + $0x10] ss:$8 sps:$4 sm:$0xff]  }
  0x40   :  { %469 = vmatpush1.bf16.msra.mxu1 %v778_v12  ;;  %v753_v25 = vld [vmem:[#allocation5 + $0x58] sm:$0xff]   ;;  %v257_v27 = vsel %vm255_vm1, %v754_v26, 0  ;;  %v755_v28 = vld [vmem:[#allocation2] ss:$8 sps:$4 sm:$0xff]   ;;  %v761_v31 = vld [vmem:[#allocation2 + $0x24] ss:$8 sps:$4 sm:$0xff]  }
  0x41   :  { %264 = vmatpush1.bf16.msra.mxu0 %v744_v3  ;;  %470 = vmatprep.subr.bf16.mxu1 %v779_v13  ;;  %v758_v29 = vld [vmem:[#allocation2 + $0x14] ss:$8 sps:$4 sm:$0xff]   ;;  %v763_v32 = vld [vmem:[#allocation2 + $0x20] ss:$8 sps:$4 sm:$0xff]   ;;  %v766_v34 = vld [vmem:[#allocation2 + $0x30] ss:$8 sps:$4 sm:$0xff]  }
  0x42   :  { %265 = vmatprep.subr.bf16.mxu0 %v898_v0  ;;  %v764_v33 = vld [vmem:[#allocation2 + $0x34] ss:$8 sps:$4 sm:$0xff]   ;;  %v767_v35 = vld [vmem:[#allocation2 + $0x44] ss:$8 sps:$4 sm:$0xff]   ;;  %v769_v36 = vld [vmem:[#allocation2 + $0x40] ss:$8 sps:$4 sm:$0xff]  }
  0x43   :  { %v770_v37 = vld [vmem:[#allocation2 + $0x54] ss:$8 sps:$4 sm:$0xff]   ;;  %v772_v38 = vld [vmem:[#allocation2 + $0x50] ss:$8 sps:$4 sm:$0xff]   ;;  %v793_v40 = vld [vmem:[#allocation7 + $0x60] ss:$8 sps:$4 sm:$0xff]  }
  0x44   :  { %471 = vmatpush1.bf16.msra.mxu1 %v781_v15  ;;  %v791_v39 = vld [vmem:[#allocation7 + $0x64] ss:$8 sps:$4 sm:$0xff]   ;;  %v794_v41 = vld [vmem:[#allocation7 + $0x74] ss:$8 sps:$4 sm:$0xff]   ;;  %v796_v42 = vld [vmem:[#allocation7 + $0x70] ss:$8 sps:$4 sm:$0xff]  }
  0x45   :  { %266 = vmatpush1.bf16.msra.mxu0 %v745_v4  ;;  %472 = vmatprep.subr.bf16.mxu1 %v782_v16  ;;  %v661_v43 = vld [vmem:[%s1048_s2] ss:$0 sm:$0xff] }
  0x46   :  { %267 = vmatprep.subr.bf16.mxu0 %v898_v0 }
  0x48   :  { %473 = vmatpush1.bf16.msra.mxu1 %v784_v18 }
  0x49   :  { %268 = vmatpush1.bf16.msra.mxu0 %v746_v6  ;;  %474 = vmatprep.subr.bf16.mxu1 %v785_v19 }
  0x4a   :  { %269 = vmatprep.subr.bf16.mxu0 %v898_v0 }
  0x4c   :  { %475 = vmatpush1.bf16.msra.mxu1 %v787_v21 }
  0x4d   :  { %270 = vmatpush1.bf16.msra.mxu0 %v747_v7  ;;  %476 = vmatprep.subr.bf16.mxu1 %v788_v22 }
  0x4e   :  { %271 = vmatprep.subr.bf16.mxu0 %v898_v0 }
  0x50   :  { %477 = vmatpush1.bf16.msra.mxu1 %v790_v24 }
  0x51   :  { %272 = vmatpush1.bf16.msra.mxu0 %v748_v8  ;;  %478 = vmatprep.subr.bf16.mxu1 %v791_v39 }
  0x52   :  { %273 = vmatprep.subr.bf16.mxu0 %v898_v0 }
  0x54   :  { %479 = vmatpush1.bf16.msra.mxu1 %v793_v40 }
  0x55   :  { %274 = vmatpush1.bf16.msra.mxu0 %v749_v14  ;;  %480 = vmatprep.subr.bf16.mxu1 %v794_v41 }
  0x56   :  { %275 = vmatprep.subr.bf16.mxu0 %v898_v0 }
  0x58   :  { %481 = vmatpush1.bf16.msra.mxu1 %v796_v42 }
  0x59   :  { %276 = vmatpush1.bf16.msra.mxu0 %v750_v17 }
  0x5a   :  { %277 = vmatprep.subr.bf16.mxu0 %v898_v0 }
  0x5d   :  { %278 = vmatpush1.bf16.msra.mxu0 %v751_v20 }
  0x5e   :  { %279 = vmatprep.subr.bf16.mxu0 %v898_v0 }
  0x61   :  { %280 = vmatpush1.bf16.msra.mxu0 %v752_v23 }
  0x62   :  { %281 = vmatprep.subr.bf16.mxu0 %v898_v0 }
  0x65   :  { %282 = vmatpush1.bf16.msra.mxu0 %v753_v25 }
  0x66   :  { %283 = vmatprep.subr.bf16.mxu0 %v898_v0 }
  0x69   :  { %284 = vmatpush1.bf16.msra.mxu0 %v257_v27 }
  0x6c   :  { %292 = vmatmul.mubr.bf16.vlgmr.msra.gmra.mrb[0].mxu0 %v755_v28 }
  0x6d   :  { %688 = vmatprep.mubr.msk.bf16.mxu0 %vm236_vm0, %v758_v29 }
  0x74   :  { %300 = vmatmul.mubr.bf16.gmra.mrb[4].mxu0 %v760_v30 }
  0x75   :  { %689 = vmatprep.mubr.msk.bf16.mxu0 %vm236_vm0, %v761_v31 }
  0x7c   :  { %308 = vmatmul.mubr.bf16.gmra.mrb[8].mxu0 %v763_v32 }
  0x7d   :  { %690 = vmatprep.mubr.msk.bf16.mxu0 %vm236_vm0, %v764_v33 }
  0x84   :  { %316 = vmatmul.mubr.bf16.gmra.mrb[12].mxu0 %v766_v34 }
  0x85   :  { %691 = vmatprep.mubr.msk.bf16.mxu0 %vm236_vm0, %v767_v35  ;;  %v376_v35 = vlaneseq }
  0x8c   :  { %324 = vmatmul.mubr.bf16.gmra.mrb[16].mxu0 %v769_v36  ;;  %v377_v36 = vshrl.u32 %v376_v35, 7 }
  0x8d   :  { %692 = vmatprep.mubr.msk.bf16.mxu0 %vm236_vm0, %v770_v37 }
  0x8e   :  { %v378_v37 = vsub.s32 0, %v377_v36  ;;  %v382_v39 = vsub.s32 1, %v377_v36 }
  0x94   :  { %332 = vmatmul.mubr.bf16.gmra.mrb[20].mxu0 %v772_v38  ;;  %v374_v38 = vld [vmem:[%s1050_s4] sm:$0x3]  ;;  %s899_s4 = smov [#allocation8]  }
  0x95   :  { %v1003_v40 = vrot.slane %v374_v38, %v378_v37  ;;  %v1005_v41 = vrot.slane %v374_v38, %v382_v39  ;;  %s648_s8 = sshll.u32 %s899_s4, 4  ;;  %s649_s8 = int_to_ptr.vmem [resolvable:$true] %s648_s8 }
  0x96   :  { %s863_s9 = scalar_lea.vmem %s649_s8, 1536  ;;  %p868_p11 = scmp.lt.s32.totalorder %s649_s8, %s649_s8 }
  0x97   :  { %p864_p10 = scmp.ne.s32.totalorder %s649_s8, %s863_s9  ;;  %p869_p12 = scmp.lt.s32.totalorder %s863_s9, %s863_s9 }
  0x99   :  { %p870_p13 = por %p869_p12, %p868_p11 }
  0x9b   :  { %p871_p0 = pnand %p870_p13, %p864_p10 }
 0x13f   :  { %v293_v44 = vpop.f32.mrb[0].mxu0 }
 0x140   :  { %v294_v45 = vadd.f32 %v661_v43, %v293_v44  ;;  %v295_v46 = vpop.f32.mrb[1].mxu0 }
 0x141   :  { %v296_v47 = vpop.f32.mrb[2].mxu0 }
 0x142   :  { %v297_v48 = vadd.f32 %v661_v43, %v296_v47  ;;  %v298_v49 = vpop.f32.mrb[3].mxu0  ;;  %v340_v50 = vmax.f32 %v294_v45, 0.0 }
 0x144   :  { %v341_v51 = vmax.f32 %v297_v48, 0.0 }
 0x146   :  { %v352_v52 = vpack.c.bf16 %v341_v51, %v340_v50 }
 0x147   :  { %v301_v53 = vpop.f32.mrb[4].mxu0 }
 0x148   :  { %v302_v54 = vadd.f32 %v661_v43, %v301_v53  ;;  %v303_v55 = vpop.f32.mrb[5].mxu0  ;;  %499 = vmatmul.mubr.bf16.vlgmr.msra.gmra.mrb[0].mxu1 %v352_v52 }
 0x149   :  { %v304_v56 = vpop.f32.mrb[6].mxu0  ;;  %508 = vmatprep.mubr.bf16.mxu1 %v898_v0 }
 0x14a   :  { %v305_v57 = vadd.f32 %v661_v43, %v304_v56  ;;  %v306_v58 = vpop.f32.mrb[7].mxu0  ;;  %v342_v59 = vmax.f32 %v302_v54, 0.0 }
 0x14c   :  { %v343_v60 = vmax.f32 %v305_v57, 0.0 }
 0x14e   :  { %v353_v61 = vpack.c.bf16 %v343_v60, %v342_v59 }
 0x14f   :  { %v309_v62 = vpop.f32.mrb[8].mxu0 }
 0x150   :  { %v310_v63 = vadd.f32 %v661_v43, %v309_v62  ;;  %v311_v1 = vpop.f32.mrb[9].mxu0  ;;  %509 = vmatmul.mubr.bf16.gmra.mrb[4].mxu1 %v353_v61 }
 0x151   :  { %v312_v2 = vpop.f32.mrb[10].mxu0  ;;  %518 = vmatprep.mubr.bf16.mxu1 %v898_v0 }
 0x152   :  { %v313_v3 = vadd.f32 %v661_v43, %v312_v2  ;;  %v314_v4 = vpop.f32.mrb[11].mxu0  ;;  %v344_v5 = vmax.f32 %v310_v63, 0.0 }
 0x154   :  { %v345_v6 = vmax.f32 %v313_v3, 0.0 }
 0x156   :  { %v354_v7 = vpack.c.bf16 %v345_v6, %v344_v5 }
 0x157   :  { %v317_v8 = vpop.f32.mrb[12].mxu0 }
 0x158   :  { %v318_v9 = vadd.f32 %v661_v43, %v317_v8  ;;  %v319_v10 = vpop.f32.mrb[13].mxu0  ;;  %519 = vmatmul.mubr.bf16.gmra.mrb[8].mxu1 %v354_v7 }
 0x159   :  { %v320_v11 = vpop.f32.mrb[14].mxu0  ;;  %528 = vmatprep.mubr.bf16.mxu1 %v898_v0 }
 0x15a   :  { %v321_v12 = vadd.f32 %v661_v43, %v320_v11  ;;  %v322_v13 = vpop.f32.mrb[15].mxu0  ;;  %v346_v14 = vmax.f32 %v318_v9, 0.0 }
 0x15c   :  { %v347_v15 = vmax.f32 %v321_v12, 0.0 }
 0x15e   :  { %v355_v16 = vpack.c.bf16 %v347_v15, %v346_v14 }
 0x15f   :  { %v325_v17 = vpop.f32.mrb[16].mxu0 }
 0x160   :  { %v326_v18 = vadd.f32 %v661_v43, %v325_v17  ;;  %v327_v19 = vpop.f32.mrb[17].mxu0  ;;  %529 = vmatmul.mubr.bf16.gmra.mrb[12].mxu1 %v355_v16 }
 0x161   :  { %v328_v20 = vpop.f32.mrb[18].mxu0  ;;  %538 = vmatprep.mubr.bf16.mxu1 %v898_v0 }
 0x162   :  { %v329_v21 = vadd.f32 %v661_v43, %v328_v20  ;;  %v330_v22 = vpop.f32.mrb[19].mxu0  ;;  %v348_v23 = vmax.f32 %v326_v18, 0.0 }
 0x164   :  { %v349_v24 = vmax.f32 %v329_v21, 0.0 }
 0x166   :  { %v356_v25 = vpack.c.bf16 %v349_v24, %v348_v23 }
 0x167   :  { %v333_v26 = vpop.f32.mrb[20].mxu0 }
 0x168   :  { %v334_v27 = vadd.f32 %v661_v43, %v333_v26  ;;  %v335_v28 = vpop.f32.mrb[21].mxu0  ;;  %539 = vmatmul.mubr.bf16.gmra.mrb[16].mxu1 %v356_v25 }
 0x169   :  { %v336_v29 = vpop.f32.mrb[22].mxu0  ;;  %548 = vmatprep.mubr.bf16.mxu1 %v898_v0 }
 0x16a   :  { %v337_v30 = vadd.f32 %v661_v43, %v336_v29  ;;  %v338_v31 = vpop.f32.mrb[23].mxu0  ;;  %v350_v32 = vmax.f32 %v334_v27, 0.0 }
 0x16c   :  { %v351_v33 = vmax.f32 %v337_v30, 0.0 }
 0x16e   :  { %v357_v34 = vpack.c.bf16 %v351_v33, %v350_v32 }
 0x170   :  { %549 = vmatmul.mubr.bf16.gmra.mrb[20].mxu1 %v357_v34 }
 0x21b   :  { %v500_v42 = vpop.f32.mrb[0].mxu1 }
 0x21c   :  { %v501_v0 = vadd.f32 %v500_v42, %v1003_v40  ;;  %v502_v43 = vpop.f32.mrb[1].mxu1 }
 0x21d   :  { %v503_v44 = vadd.f32 %v502_v43, %v1005_v41  ;;  %v504_v45 = vpop.f32.mrb[2].mxu1 }
 0x21e   :  { %v505_v46 = vadd.f32 %v504_v45, %v1003_v40  ;;  %v506_v47 = vpop.f32.mrb[3].mxu1 }
 0x21f   :  { %v721_v48 = vpack.c.bf16 %v503_v44, %v501_v0  ;;  %v507_v49 = vadd.f32 %v506_v47, %v1005_v41 }
 0x221   :  { %631 = vst [vmem:[#allocation8] sm:$0xff] %v721_v48  ;;  %v722_v50 = vpack.c.bf16 %v507_v49, %v505_v46 }
 0x223   :  { %632 = vst [vmem:[#allocation8 + $0x8] sm:$0xff] %v722_v50  ;;  %v510_v51 = vpop.f32.mrb[4].mxu1 }
 0x224   :  { %v511_v52 = vadd.f32 %v510_v51, %v1003_v40  ;;  %v512_v53 = vpop.f32.mrb[5].mxu1 }
 0x225   :  { %v513_v54 = vadd.f32 %v512_v53, %v1005_v41  ;;  %v514_v55 = vpop.f32.mrb[6].mxu1 }
 0x226   :  { %v515_v56 = vadd.f32 %v514_v55, %v1003_v40  ;;  %v516_v57 = vpop.f32.mrb[7].mxu1 }
 0x227   :  { %v723_v58 = vpack.c.bf16 %v513_v54, %v511_v52  ;;  %v517_v59 = vadd.f32 %v516_v57, %v1005_v41 }
 0x229   :  { %633 = vst [vmem:[#allocation8 + $0x10] sm:$0xff] %v723_v58  ;;  %v724_v60 = vpack.c.bf16 %v517_v59, %v515_v56 }
 0x22b   :  { %634 = vst [vmem:[#allocation8 + $0x18] sm:$0xff] %v724_v60  ;;  %v520_v61 = vpop.f32.mrb[8].mxu1 }
 0x22c   :  { %v521_v62 = vadd.f32 %v520_v61, %v1003_v40  ;;  %v522_v63 = vpop.f32.mrb[9].mxu1 }
 0x22d   :  { %v523_v1 = vadd.f32 %v522_v63, %v1005_v41  ;;  %v524_v2 = vpop.f32.mrb[10].mxu1 }
 0x22e   :  { %v525_v3 = vadd.f32 %v524_v2, %v1003_v40  ;;  %v526_v4 = vpop.f32.mrb[11].mxu1 }
 0x22f   :  { %v725_v5 = vpack.c.bf16 %v523_v1, %v521_v62  ;;  %v527_v6 = vadd.f32 %v526_v4, %v1005_v41 }
 0x231   :  { %635 = vst [vmem:[#allocation8 + $0x20] sm:$0xff] %v725_v5  ;;  %v726_v7 = vpack.c.bf16 %v527_v6, %v525_v3 }
 0x233   :  { %636 = vst [vmem:[#allocation8 + $0x28] sm:$0xff] %v726_v7  ;;  %v530_v8 = vpop.f32.mrb[12].mxu1 }
 0x234   :  { %v531_v9 = vadd.f32 %v530_v8, %v1003_v40  ;;  %v532_v10 = vpop.f32.mrb[13].mxu1 }
 0x235   :  { %v533_v11 = vadd.f32 %v532_v10, %v1005_v41  ;;  %v534_v12 = vpop.f32.mrb[14].mxu1 }
 0x236   :  { %v535_v13 = vadd.f32 %v534_v12, %v1003_v40  ;;  %v536_v14 = vpop.f32.mrb[15].mxu1 }
 0x237   :  { %v727_v15 = vpack.c.bf16 %v533_v11, %v531_v9  ;;  %v537_v16 = vadd.f32 %v536_v14, %v1005_v41 }
 0x239   :  { %637 = vst [vmem:[#allocation8 + $0x30] sm:$0xff] %v727_v15  ;;  %v728_v17 = vpack.c.bf16 %v537_v16, %v535_v13 }
 0x23b   :  { %638 = vst [vmem:[#allocation8 + $0x38] sm:$0xff] %v728_v17  ;;  %v540_v18 = vpop.f32.mrb[16].mxu1 }
 0x23c   :  { %v541_v19 = vadd.f32 %v540_v18, %v1003_v40  ;;  %v542_v20 = vpop.f32.mrb[17].mxu1 }
 0x23d   :  { %v543_v21 = vadd.f32 %v542_v20, %v1005_v41  ;;  %v544_v22 = vpop.f32.mrb[18].mxu1 }
 0x23e   :  { %v545_v23 = vadd.f32 %v544_v22, %v1003_v40  ;;  %v546_v24 = vpop.f32.mrb[19].mxu1 }
 0x23f   :  { %v729_v25 = vpack.c.bf16 %v543_v21, %v541_v19  ;;  %v547_v26 = vadd.f32 %v546_v24, %v1005_v41 }
 0x241   :  { %639 = vst [vmem:[#allocation8 + $0x40] sm:$0xff] %v729_v25  ;;  %v730_v27 = vpack.c.bf16 %v547_v26, %v545_v23 }
 0x243   :  { %640 = vst [vmem:[#allocation8 + $0x48] sm:$0xff] %v730_v27  ;;  %v550_v28 = vpop.f32.mrb[20].mxu1 }
 0x244   :  { %v551_v29 = vadd.f32 %v550_v28, %v1003_v40  ;;  %v552_v30 = vpop.f32.mrb[21].mxu1 }
 0x245   :  { %v553_v31 = vadd.f32 %v552_v30, %v1005_v41  ;;  %v554_v32 = vpop.f32.mrb[22].mxu1 }
 0x246   :  { %v555_v33 = vadd.f32 %v554_v32, %v1003_v40  ;;  %v556_v34 = vpop.f32.mrb[23].mxu1 }
 0x247   :  { %v731_v35 = vpack.c.bf16 %v553_v31, %v551_v29  ;;  %v557_v36 = vadd.f32 %v556_v34, %v1005_v41 }
 0x249   :  { %641 = vst [vmem:[#allocation8 + $0x50] sm:$0xff] %v731_v35  ;;  %v732_v37 = vpack.c.bf16 %v557_v36, %v555_v33 }
 0x24b   :  { %642 = vst [vmem:[#allocation8 + $0x58] sm:$0xff] %v732_v37 }
 0x24c   :  { %874 = shalt.err (!%p871_p0)
}
 0x24d   :  { %s875_s12 = scalar_lea.hbm %s1051_s5, 1536 }
 0x24e   :  { %p876_p1 = scmp.ne.s32.totalorder %s1051_s5, %s875_s12  ;;  %p879_p2 = scmp.lt.u32.totalorder %s875_s12, %s1051_s5 }
 0x250   :  { %p881_p3 = pnand %p879_p2, %p876_p1 }
 0x252   :  { %884 = shalt.err (!%p881_p3)
}
 0x253   :  { %654 = dma.vmem_to_hbm [thread:$0]  %s649_s8, 1536, %s1051_s5, [#allocation4], %s895_s1, %s895_s1, %s896_s17  }
 0x254   :  { %889 = dma.done.wait [#allocation4], 1536  }
 0x255   :  { %890 = vsyncadd [#allocation4], 4294965760 }
 0x256   :  { %658 = vsyncpa [#allocation3], 1 }
 0x257   :  { %659 = vsyncpa [#allocation6], 1 }
 0x258   :  { %660 = vsyncpa [#allocation4], 1 }

// kernel: tpu_custom_call.1
= control target key start
LH: loop header
LB: loop body
LE: loop exit
PB: predicated region body
PF: predicated region fallthrough
CT: control target
= control target key end

     0   :  { %10 = vsyncpa [#allocation3], 0  ;;  %s1046_s0 = inlined_call_operand.hbm [shape: bf16[96,200], index: 0, kind: input, shape index: {}]   ;;  %s1047_s1 = inlined_call_operand.hbm [shape: bf16[200,128], index: 1, kind: input, shape index: {}]   ;;  %s1048_s2 = inlined_call_operand.vmem [shape: f32[1,128], index: 2, kind: input, shape index: {}]   ;;  %s1049_s3 = inlined_call_operand.hbm [shape: bf16[128,256], index: 3, kind: input, shape index: {}]   ;;  %s1050_s4 = inlined_call_operand.vmem [shape: f32[1,256], index: 4, kind: input, shape index: {}]   ;;  %s1051_s5 = inlined_call_operand.hbm [shape: bf16[96,256], index: 5, kind: output, shape index: {}]  }
   0x1   :  { %11 = vsyncpa [#allocation6], 0 }
   0x2   :  { %12 = vsyncpa [#allocation4], 0  ;;  %s891_s18 = smov [#allocation5]   ;;  %s797_s22 = scalar_lea.hbm %s1047_s1, 1600 }
   0x3   :  { %s30_s19 = sshll.u32 %s891_s18, 4  ;;  %p798_p0 = scmp.ne.s32.totalorder %s1047_s1, %s797_s22  ;;  %s31_s19 = int_to_ptr.vmem [resolvable:$true] %s30_s19 }
   0x4   :  { %p801_p1 = scmp.lt.u32.totalorder %s797_s22, %s1047_s1 }
   0x6   :  { %p803_p2 = pnand %p801_p1, %p798_p0 }
   0x8   :  { %806 = shalt.err (!%p803_p2)
}
   0x9   :  { %s807_s27 = scalar_lea.vmem %s31_s19, 1600  ;;  %p812_p4 = scmp.lt.s32.totalorder %s31_s19, %s31_s19 }
   0xa   :  { %p808_p3 = scmp.ne.s32.totalorder %s31_s19, %s807_s27  ;;  %p813_p5 = scmp.lt.s32.totalorder %s807_s27, %s807_s27 }
   0xc   :  { %p814_p6 = por %p813_p5, %p812_p4 }
   0xe   :  { %p815_p7 = pnand %p814_p6, %p808_p3 }
  0x10   :  { %818 = shalt.err (!%p815_p7)
}
  0x11   :  { %s892_s28 = smov 64   ;;  %s893_s29 = smov 4  }
  0x12   :  { %36 = dma.hbm_to_vmem [thread:$0]  %s1047_s1, 1600, %s31_s19, [#allocation6], %s892_s28, %s892_s28, %s893_s29  }
  0x13   :  { %s894_s7 = smov [#allocation2]   ;;  %s819_s11 = scalar_lea.hbm %s1046_s0, 1536 }
  0x14   :  { %s18_s8 = sshll.u32 %s894_s7, 4  ;;  %p820_p8 = scmp.ne.s32.totalorder %s1046_s0, %s819_s11  ;;  %s19_s8 = int_to_ptr.vmem [resolvable:$true] %s18_s8 }
  0x15   :  { %p823_p9 = scmp.lt.u32.totalorder %s819_s11, %s1046_s0 }
  0x17   :  { %p825_p10 = pnand %p823_p9, %p820_p8 }
  0x19   :  { %828 = shalt.err (!%p825_p10)
}
  0x1a   :  { %s829_s16 = scalar_lea.vmem %s19_s8, 1536  ;;  %p834_p12 = scmp.lt.s32.totalorder %s19_s8, %s19_s8 }
  0x1b   :  { %p830_p11 = scmp.ne.s32.totalorder %s19_s8, %s829_s16  ;;  %p835_p13 = scmp.lt.s32.totalorder %s829_s16, %s829_s16 }
  0x1d   :  { %p836_p0 = por %p835_p13, %p834_p12 }
  0x1f   :  { %p837_p1 = pnand %p836_p0, %p830_p11 }
  0x21   :  { %840 = shalt.err (!%p837_p1)
}
  0x22   :  { %s895_s1 = smov 128   ;;  %s896_s17 = smov 8  }
  0x23   :  { %24 = dma.hbm_to_vmem [thread:$0]  %s1046_s0, 1536, %s19_s8, [#allocation3], %s895_s1, %s895_s1, %s896_s17  }
  0x24   :  { %s897_s20 = smov [#allocation7]   ;;  %s841_s24 = scalar_lea.hbm %s1049_s3, 2048 }
  0x25   :  { %s44_s21 = sshll.u32 %s897_s20, 4  ;;  %p842_p2 = scmp.ne.s32.totalorder %s1049_s3, %s841_s24  ;;  %s45_s21 = int_to_ptr.vmem [resolvable:$true] %s44_s21 }
  0x26   :  { %p845_p3 = scmp.lt.u32.totalorder %s841_s24, %s1049_s3 }
  0x28   :  { %p847_p4 = pnand %p845_p3, %p842_p2 }
  0x2a   :  { %850 = shalt.err (!%p847_p4)
}
  0x2b   :  { %s851_s29 = scalar_lea.vmem %s45_s21, 2048  ;;  %p856_p6 = scmp.lt.s32.totalorder %s45_s21, %s45_s21 }
  0x2c   :  { %p852_p5 = scmp.ne.s32.totalorder %s45_s21, %s851_s29  ;;  %p857_p7 = scmp.lt.s32.totalorder %s851_s29, %s851_s29 }
  0x2e   :  { %p858_p8 = por %p857_p7, %p856_p6 }
  0x30   :  { %p859_p9 = pnand %p858_p8, %p852_p5 }
  0x32   :  { %862 = shalt.err (!%p859_p9)
}
  0x33   :  { %50 = dma.hbm_to_vmem [thread:$0]  %s1049_s3, 2048, %s45_s21, [#allocation6], %s895_s1, %s895_s1, %s896_s17  }
  0x34   :  { %885 = dma.done.wait [#allocation3], 1536  }
  0x35   :  { %886 = vsyncadd [#allocation3], 4294965760 }
  0x36   :  { %887 = dma.done.wait [#allocation6], 3648  }
  0x37   :  { %888 = vsyncadd [#allocation6], 4294963648  ;;  %v898_v0 = vmov 0   ;;  %v742_v1 = vld [vmem:[#allocation5] sm:$0xff]   ;;  %v743_v2 = vld [vmem:[#allocation5 + $0x8] sm:$0xff]   ;;  %vm236_vm0 = vcmask 588800  }
  0x38   :  { %259 = vmatprep.subr.bf16.mxu0 %v898_v0  ;;  %498 = vmatprep.mubr.bf16.mxu1 %v898_v0  ;;  %v744_v3 = vld [vmem:[#allocation5 + $0x10] sm:$0xff]   ;;  %v745_v4 = vld [vmem:[#allocation5 + $0x18] sm:$0xff]   ;;  %v757_v5 = vld [vmem:[#allocation2 + $0x4] ss:$8 sps:$4 sm:$0xff]   ;;  %vm255_vm1 = vcmask 1043456  }
  0x39   :  { %260 = vmatpush1.bf16.msra.mxu0 %v742_v1  ;;  %v746_v6 = vld [vmem:[#allocation5 + $0x20] sm:$0xff]   ;;  %687 = vmatprep.mubr.msk.bf16.mxu0 %vm236_vm0, %v757_v5  ;;  %v747_v7 = vld [vmem:[#allocation5 + $0x28] sm:$0xff]   ;;  %v748_v8 = vld [vmem:[#allocation5 + $0x30] sm:$0xff]  }
  0x3a   :  { %261 = vmatprep.subr.bf16.mxu0 %v898_v0  ;;  %v773_v9 = vld [vmem:[#allocation7 + $0x4] ss:$8 sps:$4 sm:$0xff]   ;;  %v775_v10 = vld [vmem:[#allocation7] ss:$8 sps:$4 sm:$0xff]   ;;  %v776_v11 = vld [vmem:[#allocation7 + $0x14] ss:$8 sps:$4 sm:$0xff]  }
  0x3b   :  { %466 = vmatprep.subr.bf16.mxu1 %v773_v9  ;;  %v778_v12 = vld [vmem:[#allocation7 + $0x10] ss:$8 sps:$4 sm:$0xff]   ;;  %v779_v13 = vld [vmem:[#allocation7 + $0x24] ss:$8 sps:$4 sm:$0xff]   ;;  %v781_v15 = vld [vmem:[#allocation7 + $0x20] ss:$8 sps:$4 sm:$0xff]  }
  0x3c   :  { %467 = vmatpush1.bf16.msra.mxu1 %v775_v10  ;;  %v749_v14 = vld [vmem:[#allocation5 + $0x38] sm:$0xff]   ;;  %v750_v17 = vld [vmem:[#allocation5 + $0x40] sm:$0xff]   ;;  %v785_v19 = vld [vmem:[#allocation7 + $0x44] ss:$8 sps:$4 sm:$0xff]  }
  0x3d   :  { %262 = vmatpush1.bf16.msra.mxu0 %v743_v2  ;;  %468 = vmatprep.subr.bf16.mxu1 %v776_v11  ;;  %v782_v16 = vld [vmem:[#allocation7 + $0x34] ss:$8 sps:$4 sm:$0xff]   ;;  %v784_v18 = vld [vmem:[#allocation7 + $0x30] ss:$8 sps:$4 sm:$0xff]   ;;  %v751_v20 = vld [vmem:[#allocation5 + $0x48] sm:$0xff]  }
  0x3e   :  { %263 = vmatprep.subr.bf16.mxu0 %v898_v0  ;;  %v787_v21 = vld [vmem:[#allocation7 + $0x40] ss:$8 sps:$4 sm:$0xff]   ;;  %v788_v22 = vld [vmem:[#allocation7 + $0x54] ss:$8 sps:$4 sm:$0xff]   ;;  %v752_v23 = vld [vmem:[#allocation5 + $0x50] sm:$0xff]  }
  0x3f   :  { %v790_v24 = vld [vmem:[#allocation7 + $0x50] ss:$8 sps:$4 sm:$0xff]   ;;  %v754_v26 = vld [vmem:[#allocation5 + $0x60] ss:$0 sps:$4 sm:$0xff]   ;;  %v760_v30 = vld [vmem:[#allocation2 + $0x10] ss:$8 sps:$4 sm:$0xff]  }
  0x40   :  { %469 = vmatpush1.bf16.msra.mxu1 %v778_v12  ;;  %v753_v25 = vld [vmem:[#allocation5 + $0x58] sm:$0xff]   ;;  %v257_v27 = vsel %vm255_vm1, %v754_v26, 0  ;;  %v755_v28 = vld [vmem:[#allocation2] ss:$8 sps:$4 sm:$0xff]   ;;  %v761_v31 = vld [vmem:[#allocation2 + $0x24] ss:$8 sps:$4 sm:$0xff]  }
  0x41   :  { %264 = vmatpush1.bf16.msra.mxu0 %v744_v3  ;;  %470 = vmatprep.subr.bf16.mxu1 %v779_v13  ;;  %v758_v29 = vld [vmem:[#allocation2 + $0x14] ss:$8 sps:$4 sm:$0xff]   ;;  %v763_v32 = vld [vmem:[#allocation2 + $0x20] ss:$8 sps:$4 sm:$0xff]   ;;  %v766_v34 = vld [vmem:[#allocation2 + $0x30] ss:$8 sps:$4 sm:$0xff]  }
  0x42   :  { %265 = vmatprep.subr.bf16.mxu0 %v898_v0  ;;  %v764_v33 = vld [vmem:[#allocation2 + $0x34] ss:$8 sps:$4 sm:$0xff]   ;;  %v767_v35 = vld [vmem:[#allocation2 + $0x44] ss:$8 sps:$4 sm:$0xff]   ;;  %v769_v36 = vld [vmem:[#allocation2 + $0x40] ss:$8 sps:$4 sm:$0xff]  }
  0x43   :  { %v770_v37 = vld [vmem:[#allocation2 + $0x54] ss:$8 sps:$4 sm:$0xff]   ;;  %v772_v38 = vld [vmem:[#allocation2 + $0x50] ss:$8 sps:$4 sm:$0xff]   ;;  %v793_v40 = vld [vmem:[#allocation7 + $0x60] ss:$8 sps:$4 sm:$0xff]  }
  0x44   :  { %471 = vmatpush1.bf16.msra.mxu1 %v781_v15  ;;  %v791_v39 = vld [vmem:[#allocation7 + $0x64] ss:$8 sps:$4 sm:$0xff]   ;;  %v794_v41 = vld [vmem:[#allocation7 + $0x74] ss:$8 sps:$4 sm:$0xff]   ;;  %v796_v42 = vld [vmem:[#allocation7 + $0x70] ss:$8 sps:$4 sm:$0xff]  }
  0x45   :  { %266 = vmatpush1.bf16.msra.mxu0 %v745_v4  ;;  %472 = vmatprep.subr.bf16.mxu1 %v782_v16  ;;  %v661_v43 = vld [vmem:[%s1048_s2] ss:$0 sm:$0xff] }
  0x46   :  { %267 = vmatprep.subr.bf16.mxu0 %v898_v0 }
  0x48   :  { %473 = vmatpush1.bf16.msra.mxu1 %v784_v18 }
  0x49   :  { %268 = vmatpush1.bf16.msra.mxu0 %v746_v6  ;;  %474 = vmatprep.subr.bf16.mxu1 %v785_v19 }
  0x4a   :  { %269 = vmatprep.subr.bf16.mxu0 %v898_v0 }
  0x4c   :  { %475 = vmatpush1.bf16.msra.mxu1 %v787_v21 }
  0x4d   :  { %270 = vmatpush1.bf16.msra.mxu0 %v747_v7  ;;  %476 = vmatprep.subr.bf16.mxu1 %v788_v22 }
  0x4e   :  { %271 = vmatprep.subr.bf16.mxu0 %v898_v0 }
  0x50   :  { %477 = vmatpush1.bf16.msra.mxu1 %v790_v24 }
  0x51   :  { %272 = vmatpush1.bf16.msra.mxu0 %v748_v8  ;;  %478 = vmatprep.subr.bf16.mxu1 %v791_v39 }
  0x52   :  { %273 = vmatprep.subr.bf16.mxu0 %v898_v0 }
  0x54   :  { %479 = vmatpush1.bf16.msra.mxu1 %v793_v40 }
  0x55   :  { %274 = vmatpush1.bf16.msra.mxu0 %v749_v14  ;;  %480 = vmatprep.subr.bf16.mxu1 %v794_v41 }
  0x56   :  { %275 = vmatprep.subr.bf16.mxu0 %v898_v0 }
  0x58   :  { %481 = vmatpush1.bf16.msra.mxu1 %v796_v42 }
  0x59   :  { %276 = vmatpush1.bf16.msra.mxu0 %v750_v17 }
  0x5a   :  { %277 = vmatprep.subr.bf16.mxu0 %v898_v0 }
  0x5d   :  { %278 = vmatpush1.bf16.msra.mxu0 %v751_v20 }
  0x5e   :  { %279 = vmatprep.subr.bf16.mxu0 %v898_v0 }
  0x61   :  { %280 = vmatpush1.bf16.msra.mxu0 %v752_v23 }
  0x62   :  { %281 = vmatprep.subr.bf16.mxu0 %v898_v0 }
  0x65   :  { %282 = vmatpush1.bf16.msra.mxu0 %v753_v25 }
  0x66   :  { %283 = vmatprep.subr.bf16.mxu0 %v898_v0 }
  0x69   :  { %284 = vmatpush1.bf16.msra.mxu0 %v257_v27 }
  0x6c   :  { %292 = vmatmul.mubr.bf16.vlgmr.msra.gmra.mrb[0].mxu0 %v755_v28 }
  0x6d   :  { %688 = vmatprep.mubr.msk.bf16.mxu0 %vm236_vm0, %v758_v29 }
  0x74   :  { %300 = vmatmul.mubr.bf16.gmra.mrb[4].mxu0 %v760_v30 }
  0x75   :  { %689 = vmatprep.mubr.msk.bf16.mxu0 %vm236_vm0, %v761_v31 }
  0x7c   :  { %308 = vmatmul.mubr.bf16.gmra.mrb[8].mxu0 %v763_v32 }
  0x7d   :  { %690 = vmatprep.mubr.msk.bf16.mxu0 %vm236_vm0, %v764_v33 }
  0x84   :  { %316 = vmatmul.mubr.bf16.gmra.mrb[12].mxu0 %v766_v34 }
  0x85   :  { %691 = vmatprep.mubr.msk.bf16.mxu0 %vm236_vm0, %v767_v35  ;;  %v376_v35 = vlaneseq }
  0x8c   :  { %324 = vmatmul.mubr.bf16.gmra.mrb[16].mxu0 %v769_v36  ;;  %v377_v36 = vshrl.u32 %v376_v35, 7 }
  0x8d   :  { %692 = vmatprep.mubr.msk.bf16.mxu0 %vm236_vm0, %v770_v37 }
  0x8e   :  { %v378_v37 = vsub.s32 0, %v377_v36  ;;  %v382_v39 = vsub.s32 1, %v377_v36 }
  0x94   :  { %332 = vmatmul.mubr.bf16.gmra.mrb[20].mxu0 %v772_v38  ;;  %v374_v38 = vld [vmem:[%s1050_s4] sm:$0x3]  ;;  %s899_s4 = smov [#allocation8]  }
  0x95   :  { %v1003_v40 = vrot.slane %v374_v38, %v378_v37  ;;  %v1005_v41 = vrot.slane %v374_v38, %v382_v39  ;;  %s648_s8 = sshll.u32 %s899_s4, 4  ;;  %s649_s8 = int_to_ptr.vmem [resolvable:$true] %s648_s8 }
  0x96   :  { %s863_s9 = scalar_lea.vmem %s649_s8, 1536  ;;  %p868_p11 = scmp.lt.s32.totalorder %s649_s8, %s649_s8 }
  0x97   :  { %p864_p10 = scmp.ne.s32.totalorder %s649_s8, %s863_s9  ;;  %p869_p12 = scmp.lt.s32.totalorder %s863_s9, %s863_s9 }
  0x99   :  { %p870_p13 = por %p869_p12, %p868_p11 }
  0x9b   :  { %p871_p0 = pnand %p870_p13, %p864_p10 }
 0x13f   :  { %v293_v44 = vpop.f32.mrb[0].mxu0 }
 0x140   :  { %v294_v45 = vadd.f32 %v661_v43, %v293_v44  ;;  %v295_v46 = vpop.f32.mrb[1].mxu0 }
 0x141   :  { %v296_v47 = vpop.f32.mrb[2].mxu0 }
 0x142   :  { %v297_v48 = vadd.f32 %v661_v43, %v296_v47  ;;  %v298_v49 = vpop.f32.mrb[3].mxu0  ;;  %v340_v50 = vmax.f32 %v294_v45, 0.0 }
 0x144   :  { %v341_v51 = vmax.f32 %v297_v48, 0.0 }
 0x146   :  { %v352_v52 = vpack.c.bf16 %v341_v51, %v340_v50 }
 0x147   :  { %v301_v53 = vpop.f32.mrb[4].mxu0 }
 0x148   :  { %v302_v54 = vadd.f32 %v661_v43, %v301_v53  ;;  %v303_v55 = vpop.f32.mrb[5].mxu0  ;;  %499 = vmatmul.mubr.bf16.vlgmr.msra.gmra.mrb[0].mxu1 %v352_v52 }
 0x149   :  { %v304_v56 = vpop.f32.mrb[6].mxu0  ;;  %508 = vmatprep.mubr.bf16.mxu1 %v898_v0 }
 0x14a   :  { %v305_v57 = vadd.f32 %v661_v43, %v304_v56  ;;  %v306_v58 = vpop.f32.mrb[7].mxu0  ;;  %v342_v59 = vmax.f32 %v302_v54, 0.0 }
 0x14c   :  { %v343_v60 = vmax.f32 %v305_v57, 0.0 }
 0x14e   :  { %v353_v61 = vpack.c.bf16 %v343_v60, %v342_v59 }
 0x14f   :  { %v309_v62 = vpop.f32.mrb[8].mxu0 }
 0x150   :  { %v310_v63 = vadd.f32 %v661_v43, %v309_v62  ;;  %v311_v1 = vpop.f32.mrb[9].mxu0  ;;  %509 = vmatmul.mubr.bf16.gmra.mrb[4].mxu1 %v353_v61 }
 0x151   :  { %v312_v2 = vpop.f32.mrb[10].mxu0  ;;  %518 = vmatprep.mubr.bf16.mxu1 %v898_v0 }
 0x152   :  { %v313_v3 = vadd.f32 %v661_v43, %v312_v2  ;;  %v314_v4 = vpop.f32.mrb[11].mxu0  ;;  %v344_v5 = vmax.f32 %v310_v63, 0.0 }
 0x154   :  { %v345_v6 = vmax.f32 %v313_v3, 0.0 }
 0x156   :  { %v354_v7 = vpack.c.bf16 %v345_v6, %v344_v5 }
 0x157   :  { %v317_v8 = vpop.f32.mrb[12].mxu0 }
 0x158   :  { %v318_v9 = vadd.f32 %v661_v43, %v317_v8  ;;  %v319_v10 = vpop.f32.mrb[13].mxu0  ;;  %519 = vmatmul.mubr.bf16.gmra.mrb[8].mxu1 %v354_v7 }
 0x159   :  { %v320_v11 = vpop.f32.mrb[14].mxu0  ;;  %528 = vmatprep.mubr.bf16.mxu1 %v898_v0 }
 0x15a   :  { %v321_v12 = vadd.f32 %v661_v43, %v320_v11  ;;  %v322_v13 = vpop.f32.mrb[15].mxu0  ;;  %v346_v14 = vmax.f32 %v318_v9, 0.0 }
 0x15c   :  { %v347_v15 = vmax.f32 %v321_v12, 0.0 }
 0x15e   :  { %v355_v16 = vpack.c.bf16 %v347_v15, %v346_v14 }
 0x15f   :  { %v325_v17 = vpop.f32.mrb[16].mxu0 }
 0x160   :  { %v326_v18 = vadd.f32 %v661_v43, %v325_v17  ;;  %v327_v19 = vpop.f32.mrb[17].mxu0  ;;  %529 = vmatmul.mubr.bf16.gmra.mrb[12].mxu1 %v355_v16 }
 0x161   :  { %v328_v20 = vpop.f32.mrb[18].mxu0  ;;  %538 = vmatprep.mubr.bf16.mxu1 %v898_v0 }
 0x162   :  { %v329_v21 = vadd.f32 %v661_v43, %v328_v20  ;;  %v330_v22 = vpop.f32.mrb[19].mxu0  ;;  %v348_v23 = vmax.f32 %v326_v18, 0.0 }
 0x164   :  { %v349_v24 = vmax.f32 %v329_v21, 0.0 }
 0x166   :  { %v356_v25 = vpack.c.bf16 %v349_v24, %v348_v23 }
 0x167   :  { %v333_v26 = vpop.f32.mrb[20].mxu0 }
 0x168   :  { %v334_v27 = vadd.f32 %v661_v43, %v333_v26  ;;  %v335_v28 = vpop.f32.mrb[21].mxu0  ;;  %539 = vmatmul.mubr.bf16.gmra.mrb[16].mxu1 %v356_v25 }
 0x169   :  { %v336_v29 = vpop.f32.mrb[22].mxu0  ;;  %548 = vmatprep.mubr.bf16.mxu1 %v898_v0 }
 0x16a   :  { %v337_v30 = vadd.f32 %v661_v43, %v336_v29  ;;  %v338_v31 = vpop.f32.mrb[23].mxu0  ;;  %v350_v32 = vmax.f32 %v334_v27, 0.0 }
 0x16c   :  { %v351_v33 = vmax.f32 %v337_v30, 0.0 }
 0x16e   :  { %v357_v34 = vpack.c.bf16 %v351_v33, %v350_v32 }
 0x170   :  { %549 = vmatmul.mubr.bf16.gmra.mrb[20].mxu1 %v357_v34 }
 0x21b   :  { %v500_v42 = vpop.f32.mrb[0].mxu1 }
 0x21c   :  { %v501_v0 = vadd.f32 %v500_v42, %v1003_v40  ;;  %v502_v43 = vpop.f32.mrb[1].mxu1 }
 0x21d   :  { %v503_v44 = vadd.f32 %v502_v43, %v1005_v41  ;;  %v504_v45 = vpop.f32.mrb[2].mxu1 }
 0x21e   :  { %v505_v46 = vadd.f32 %v504_v45, %v1003_v40  ;;  %v506_v47 = vpop.f32.mrb[3].mxu1 }
 0x21f   :  { %v721_v48 = vpack.c.bf16 %v503_v44, %v501_v0  ;;  %v507_v49 = vadd.f32 %v506_v47, %v1005_v41 }
 0x221   :  { %631 = vst [vmem:[#allocation8] sm:$0xff] %v721_v48  ;;  %v722_v50 = vpack.c.bf16 %v507_v49, %v505_v46 }
 0x223   :  { %632 = vst [vmem:[#allocation8 + $0x8] sm:$0xff] %v722_v50  ;;  %v510_v51 = vpop.f32.mrb[4].mxu1 }
 0x224   :  { %v511_v52 = vadd.f32 %v510_v51, %v1003_v40  ;;  %v512_v53 = vpop.f32.mrb[5].mxu1 }
 0x225   :  { %v513_v54 = vadd.f32 %v512_v53, %v1005_v41  ;;  %v514_v55 = vpop.f32.mrb[6].mxu1 }
 0x226   :  { %v515_v56 = vadd.f32 %v514_v55, %v1003_v40  ;;  %v516_v57 = vpop.f32.mrb[7].mxu1 }
 0x227   :  { %v723_v58 = vpack.c.bf16 %v513_v54, %v511_v52  ;;  %v517_v59 = vadd.f32 %v516_v57, %v1005_v41 }
 0x229   :  { %633 = vst [vmem:[#allocation8 + $0x10] sm:$0xff] %v723_v58  ;;  %v724_v60 = vpack.c.bf16 %v517_v59, %v515_v56 }
 0x22b   :  { %634 = vst [vmem:[#allocation8 + $0x18] sm:$0xff] %v724_v60  ;;  %v520_v61 = vpop.f32.mrb[8].mxu1 }
 0x22c   :  { %v521_v62 = vadd.f32 %v520_v61, %v1003_v40  ;;  %v522_v63 = vpop.f32.mrb[9].mxu1 }
 0x22d   :  { %v523_v1 = vadd.f32 %v522_v63, %v1005_v41  ;;  %v524_v2 = vpop.f32.mrb[10].mxu1 }
 0x22e   :  { %v525_v3 = vadd.f32 %v524_v2, %v1003_v40  ;;  %v526_v4 = vpop.f32.mrb[11].mxu1 }
 0x22f   :  { %v725_v5 = vpack.c.bf16 %v523_v1, %v521_v62  ;;  %v527_v6 = vadd.f32 %v526_v4, %v1005_v41 }
 0x231   :  { %635 = vst [vmem:[#allocation8 + $0x20] sm:$0xff] %v725_v5  ;;  %v726_v7 = vpack.c.bf16 %v527_v6, %v525_v3 }
 0x233   :  { %636 = vst [vmem:[#allocation8 + $0x28] sm:$0xff] %v726_v7  ;;  %v530_v8 = vpop.f32.mrb[12].mxu1 }
 0x234   :  { %v531_v9 = vadd.f32 %v530_v8, %v1003_v40  ;;  %v532_v10 = vpop.f32.mrb[13].mxu1 }
 0x235   :  { %v533_v11 = vadd.f32 %v532_v10, %v1005_v41  ;;  %v534_v12 = vpop.f32.mrb[14].mxu1 }
 0x236   :  { %v535_v13 = vadd.f32 %v534_v12, %v1003_v40  ;;  %v536_v14 = vpop.f32.mrb[15].mxu1 }
 0x237   :  { %v727_v15 = vpack.c.bf16 %v533_v11, %v531_v9  ;;  %v537_v16 = vadd.f32 %v536_v14, %v1005_v41 }
 0x239   :  { %637 = vst [vmem:[#allocation8 + $0x30] sm:$0xff] %v727_v15  ;;  %v728_v17 = vpack.c.bf16 %v537_v16, %v535_v13 }
 0x23b   :  { %638 = vst [vmem:[#allocation8 + $0x38] sm:$0xff] %v728_v17  ;;  %v540_v18 = vpop.f32.mrb[16].mxu1 }
 0x23c   :  { %v541_v19 = vadd.f32 %v540_v18, %v1003_v40  ;;  %v542_v20 = vpop.f32.mrb[17].mxu1 }
 0x23d   :  { %v543_v21 = vadd.f32 %v542_v20, %v1005_v41  ;;  %v544_v22 = vpop.f32.mrb[18].mxu1 }
 0x23e   :  { %v545_v23 = vadd.f32 %v544_v22, %v1003_v40  ;;  %v546_v24 = vpop.f32.mrb[19].mxu1 }
 0x23f   :  { %v729_v25 = vpack.c.bf16 %v543_v21, %v541_v19  ;;  %v547_v26 = vadd.f32 %v546_v24, %v1005_v41 }
 0x241   :  { %639 = vst [vmem:[#allocation8 + $0x40] sm:$0xff] %v729_v25  ;;  %v730_v27 = vpack.c.bf16 %v547_v26, %v545_v23 }
 0x243   :  { %640 = vst [vmem:[#allocation8 + $0x48] sm:$0xff] %v730_v27  ;;  %v550_v28 = vpop.f32.mrb[20].mxu1 }
 0x244   :  { %v551_v29 = vadd.f32 %v550_v28, %v1003_v40  ;;  %v552_v30 = vpop.f32.mrb[21].mxu1 }
 0x245   :  { %v553_v31 = vadd.f32 %v552_v30, %v1005_v41  ;;  %v554_v32 = vpop.f32.mrb[22].mxu1 }
 0x246   :  { %v555_v33 = vadd.f32 %v554_v32, %v1003_v40  ;;  %v556_v34 = vpop.f32.mrb[23].mxu1 }
 0x247   :  { %v731_v35 = vpack.c.bf16 %v553_v31, %v551_v29  ;;  %v557_v36 = vadd.f32 %v556_v34, %v1005_v41 }
 0x249   :  { %641 = vst [vmem:[#allocation8 + $0x50] sm:$0xff] %v731_v35  ;;  %v732_v37 = vpack.c.bf16 %v557_v36, %v555_v33 }
 0x24b   :  { %642 = vst [vmem:[#allocation8 + $0x58] sm:$0xff] %v732_v37 }
 0x24c   :  { %874 = shalt.err (!%p871_p0)
}
 0x24d   :  { %s875_s12 = scalar_lea.hbm %s1051_s5, 1536 }
 0x24e   :  { %p876_p1 = scmp.ne.s32.totalorder %s1051_s5, %s875_s12  ;;  %p879_p2 = scmp.lt.u32.totalorder %s875_s12, %s1051_s5 }
 0x250   :  { %p881_p3 = pnand %p879_p2, %p876_p1 }
 0x252   :  { %884 = shalt.err (!%p881_p3)
}
 0x253   :  { %654 = dma.vmem_to_hbm [thread:$0]  %s649_s8, 1536, %s1051_s5, [#allocation4], %s895_s1, %s895_s1, %s896_s17  }
 0x254   :  { %889 = dma.done.wait [#allocation4], 1536  }
 0x255   :  { %890 = vsyncadd [#allocation4], 4294965760 }
 0x256   :  { %658 = vsyncpa [#allocation3], 1 }
 0x257   :  { %659 = vsyncpa [#allocation6], 1 }
 0x258   :  { %660 = vsyncpa [#allocation4], 1 }

</bundles_post_ra>
